<compile_context>
chip_gen: v6e
topology: v6e:2x2x1
jax: 0.10.0
libtpu: 0.0.40
codegen_flags: <defaults>
</compile_context>

<pallas_src>
import functools
import math

import jax
import jax.numpy as jnp
from jax import lax
from jax.experimental import pallas as pl
from jax.experimental.pallas import tpu as pltpu


_VMEM_LIMIT = 32 * 1024 * 1024   # modest scoped-VMEM cap; leaves headroom on v7x (64 MiB)
_NEG_INF = -1e30


def _tile(dim, cap, align):
    """Largest tile <= cap that is either the full dim or an `align` multiple dividing dim."""
    if dim <= cap:
        return dim
    t = (cap // align) * align
    while t >= align:
        if dim % t == 0:
            return t
        t -= align
    return dim   # fall back to the full (untiled) dimension


# ---------------------------------------------------------------------------
# GroupNorm statistics kernel: per-channel scale/shift so that
#   normalized(x) = x * scale + shift   (gamma/beta folded in)
# Tiled over S so only a (ts, C) slab is live per step (v7x-friendly).
# ---------------------------------------------------------------------------

def _gn_stats_kernel(x_ref, onehot_ref, gamma_ref, beta_ref,
                     scale_ref, shift_ref, s1_ref, s2_ref, *, eps, inv_count):
    si = pl.program_id(1)

    @pl.when(si == 0)
    def _init():
        s1_ref[...] = jnp.zeros(s1_ref.shape, jnp.float32)
        s2_ref[...] = jnp.zeros(s2_ref.shape, jnp.float32)

    x = x_ref[0].astype(jnp.float32)                       # (ts, C)
    s1_ref[...] += jnp.sum(x, axis=0, keepdims=True)       # (1, C)
    s2_ref[...] += jnp.sum(x * x, axis=0, keepdims=True)   # (1, C)

    @pl.when(si == pl.num_programs(1) - 1)
    def _finalize():
        onehot = onehot_ref[...]                            # (C, G) f32 one-hot
        g_mean = jnp.dot(s1_ref[...], onehot,
                         preferred_element_type=jnp.float32) * inv_count   # (1, G)
        g_sqm = jnp.dot(s2_ref[...], onehot,
                        preferred_element_type=jnp.float32) * inv_count    # (1, G)
        # TODO(synk): E[x^2]-E[x]^2 in f32 can cancel for very long sequences /
        # large-mean activations; switch to a two-pass centered variance there.
        g_rstd = lax.rsqrt(g_sqm - g_mean * g_mean + eps)                   # (1, G)
        # Scatter group stats back to channels: contract the group axis (no transpose).
        mean_c = lax.dot_general(g_mean, onehot, (((1,), (1,)), ((), ())),
                                 preferred_element_type=jnp.float32)        # (1, C)
        rstd_c = lax.dot_general(g_rstd, onehot, (((1,), (1,)), ((), ())),
                                 preferred_element_type=jnp.float32)        # (1, C)
        sc = rstd_c * gamma_ref[...].astype(jnp.float32)
        scale_ref[0] = sc
        shift_ref[0] = beta_ref[...].astype(jnp.float32) - mean_c * sc


def pallas_group_norm_stats(x, gamma, beta, num_groups, eps):
    """x: (B, S, C); gamma/beta: (1, C). Returns (scale, shift), each (B, 1, C) f32."""
    b, s, c = x.shape
    assert c % num_groups == 0
    gs = c // num_groups
    onehot = (jnp.arange(c, dtype=jnp.int32)[:, None] // gs
              == jnp.arange(num_groups, dtype=jnp.int32)[None, :]).astype(jnp.float32)
    ts = _tile(s, 1024, 8)
    kernel = functools.partial(_gn_stats_kernel, eps=eps, inv_count=1.0 / float(s * gs))
    return pl.pallas_call(
        kernel,
        out_shape=(jax.ShapeDtypeStruct((b, 1, c), jnp.float32),
                   jax.ShapeDtypeStruct((b, 1, c), jnp.float32)),
        grid_spec=pltpu.PrefetchScalarGridSpec(
            num_scalar_prefetch=0,
            grid=(b, s // ts),
            in_specs=[
                pl.BlockSpec((1, ts, c), lambda i, j: (i, j, 0)),
                pl.BlockSpec((c, num_groups), lambda i, j: (0, 0)),
                pl.BlockSpec((1, c), lambda i, j: (0, 0)),
                pl.BlockSpec((1, c), lambda i, j: (0, 0)),
            ],
            out_specs=[pl.BlockSpec((1, 1, c), lambda i, j: (i, 0, 0)),
                       pl.BlockSpec((1, 1, c), lambda i, j: (i, 0, 0))],
            scratch_shapes=[pltpu.VMEM((1, c), jnp.float32),
                            pltpu.VMEM((1, c), jnp.float32)],
        ),
        compiler_params=pltpu.CompilerParams(
            dimension_semantics=("parallel", "arbitrary"),
            vmem_limit_bytes=_VMEM_LIMIT,
        ),
    )(x, onehot, gamma, beta)


# ---------------------------------------------------------------------------
# Fused (GroupNorm-apply + QKV Linear): y = ((x * scale + shift) @ W) + b
# Weight held VMEM-resident (constant BlockSpec -> DMA'd once).
# ---------------------------------------------------------------------------

def _norm_qkv_kernel(x_ref, sc_ref, sh_ref, w_ref, b_ref, o_ref):
    xn = x_ref[0].astype(jnp.float32) * sc_ref[0] + sh_ref[0]          # (tm, C) f32
    y = jnp.dot(xn.astype(w_ref.dtype), w_ref[...],
                preferred_element_type=jnp.float32)                     # (tm, N) f32
    o_ref[0] = (y + b_ref[...].astype(jnp.float32)).astype(o_ref.dtype)


def pallas_norm_qkv_linear(x, scale, shift, w, b):
    """x: (B, S, C); scale/shift: (B, 1, C) f32; w: (C, N); b: (1, N) -> (B, S, N)."""
    bsz, s, c = x.shape
    cw, n = w.shape
    assert cw == c
    tm = _tile(s, 512, 8)
    # TODO(synk): for very large C*N the resident-weight block should fall back to a
    # K/N-tiled grid with an f32 VMEM accumulator.
    itemsize = x.dtype.itemsize
    cost = pl.CostEstimate(flops=2 * bsz * s * c * n, transcendentals=0,
                           bytes_accessed=int(itemsize * (bsz * s * (c + n) + c * n)))
    return pl.pallas_call(
        _norm_qkv_kernel,
        out_shape=jax.ShapeDtypeStruct((bsz, s, n), x.dtype),
        grid_spec=pltpu.PrefetchScalarGridSpec(
            num_scalar_prefetch=0,
            grid=(bsz, s // tm),
            in_specs=[
                pl.BlockSpec((1, tm, c), lambda bb, i: (bb, i, 0)),
                pl.BlockSpec((1, 1, c), lambda bb, i: (bb, 0, 0)),
                pl.BlockSpec((1, 1, c), lambda bb, i: (bb, 0, 0)),
                pl.BlockSpec((c, n), lambda bb, i: (0, 0)),      # resident weight
                pl.BlockSpec((1, n), lambda bb, i: (0, 0)),      # resident bias
            ],
            out_specs=pl.BlockSpec((1, tm, n), lambda bb, i: (bb, i, 0)),
        ),
        compiler_params=pltpu.CompilerParams(
            dimension_semantics=("parallel", "parallel"),
            vmem_limit_bytes=_VMEM_LIMIT,
        ),
        cost_estimate=cost,
    )(x, scale, shift, w, b)


# ---------------------------------------------------------------------------
# Flash attention on the fused QKV activation with the output projection,
# bias and residual add fused into the finalize (w_out VMEM-resident).
# ---------------------------------------------------------------------------

def _mha_out_proj_kernel(q_ref, k_ref, v_ref, w_ref, b_ref, r_ref, o_ref,
                         m_ref, l_ref, acc_ref, *, n_heads, dim_head, causal):
    qi = pl.program_id(1)
    ki = pl.program_id(2)
    nk = pl.num_programs(2)
    tq = q_ref.shape[1]
    tk = k_ref.shape[1]

    @pl.when(ki == 0)
    def _init():
        m_ref[...] = jnp.full(m_ref.shape, -jnp.inf, jnp.float32)
        l_ref[...] = jnp.zeros(l_ref.shape, jnp.float32)
        acc_ref[...] = jnp.zeros(acc_ref.shape, jnp.float32)

    def _tile_update():
        if causal:
            q_pos = qi * tq + lax.broadcasted_iota(jnp.int32, (tq, tk), 0)
            k_pos = ki * tk + lax.broadcasted_iota(jnp.int32, (tq, tk), 1)
            allow = q_pos >= k_pos
        # TODO(synk): for n_heads >= 8 switch this unrolled Python loop to a
        # lax.fori_loop over the leading head axis to bound vreg live ranges.
        for h in range(n_heads):
            lo = h * dim_head
            hi = lo + dim_head
            qh = q_ref[0, :, lo:hi]        # softmax scale already folded into w_qkv
            kh = k_ref[0, :, lo:hi]
            vh = v_ref[0, :, lo:hi]
            # q @ k^T by contracting the head dims directly (no materialized k transpose;
            # verified clean in the previous revision's lowering).
            s = lax.dot_general(qh, kh, (((1,), (1,)), ((), ())),
                                preferred_element_type=jnp.float32)       # (tq, tk)
            if causal:
                s = jnp.where(allow, s, _NEG_INF)
            m_prev = m_ref[h]                                              # (tq, 1)
            m_new = jnp.maximum(m_prev, jnp.max(s, axis=-1, keepdims=True))
            alpha = jnp.exp(m_prev - m_new)
            p = jnp.exp(s - m_new)                                         # (tq, tk)
            l_ref[h] = alpha * l_ref[h] + jnp.sum(p, axis=-1, keepdims=True)
            acc_ref[h] = alpha * acc_ref[h] + jnp.dot(
                p.astype(vh.dtype), vh, preferred_element_type=jnp.float32)
            m_ref[h] = m_new

    if causal:
        # Skip KV tiles that are entirely above the diagonal for this q tile.
        # (Safe: tiles are visited in ascending ki and tile ki=0 always has allowed
        #  entries, so m/l are well-defined before any skipped tile.)
        @pl.when(ki * tk < (qi + 1) * tq)
        def _guarded():
            _tile_update()
    else:
        _tile_update()

    @pl.when(ki == nk - 1)
    def _finalize():
        # Fused epilogue: out = residual + softmax(qk^T) v @ w_out + b_out.
        proj = r_ref[0].astype(jnp.float32) + b_ref[...].astype(jnp.float32)   # (tq, C)
        for h in range(n_heads):
            lo = h * dim_head
            hi = lo + dim_head
            att_h = (acc_ref[h] * pl.reciprocal(l_ref[h], approx=True)).astype(w_ref.dtype)
            proj = proj + jnp.dot(att_h, w_ref[lo:hi, :],
                                  preferred_element_type=jnp.float32)
        o_ref[0] = proj.astype(o_ref.dtype)    # single lane-dense (tq, C) store


def pallas_flash_mha_out_proj(qkv, w_out, b_out, residual, n_heads, dim_head,
                              causal=False):
    """qkv: (B, S, 3*H*D) fused projection; returns residual + attn(qkv) @ w_out + b_out."""
    b, s, three_c = qkv.shape
    c = n_heads * dim_head
    assert three_c == 3 * c
    # BlockSpec lane rule: q/k/v column blocks are H*D wide inside a 3*H*D array.
    # TODO(synk): widths not a multiple of 128 need a full-width qkv block fallback.
    assert c % 128 == 0, "n_heads * dim_head must be a multiple of 128"

    tq = _tile(s, 512, 8)        # larger q tile -> fewer K/V re-streams from HBM
    tk = _tile(s, 512, 8)
    grid = (b, s // tq, s // tk)

    kernel = functools.partial(_mha_out_proj_kernel, n_heads=n_heads,
                               dim_head=dim_head, causal=causal)

    itemsize = qkv.dtype.itemsize
    bytes_accessed = int(itemsize * (b * s * c                       # Q columns
                                     + 2 * b * (s // tq) * s * c     # K/V re-read per q tile
                                     + 2 * b * s * c                 # residual + output
                                     + c * c))                       # resident w_out
    cost = pl.CostEstimate(
        flops=4 * b * n_heads * s * s * dim_head + 2 * b * s * c * c,
        transcendentals=b * n_heads * s * s,
        bytes_accessed=bytes_accessed)

    return pl.pallas_call(
        kernel,
        out_shape=jax.ShapeDtypeStruct((b, s, c), qkv.dtype),
        grid_spec=pltpu.PrefetchScalarGridSpec(
            num_scalar_prefetch=0,
            grid=grid,
            in_specs=[
                # Head/QKV split is pure DMA addressing: the same fused activation is
                # passed three times with different column-block index_maps.
                pl.BlockSpec((1, tq, c), lambda bb, qi, ki: (bb, qi, 0)),   # Q columns
                pl.BlockSpec((1, tk, c), lambda bb, qi, ki: (bb, ki, 1)),   # K columns
                pl.BlockSpec((1, tk, c), lambda bb, qi, ki: (bb, ki, 2)),   # V columns
                pl.BlockSpec((c, c), lambda bb, qi, ki: (0, 0)),            # resident w_out
                pl.BlockSpec((1, c), lambda bb, qi, ki: (0, 0)),            # resident b_out
                pl.BlockSpec((1, tq, c), lambda bb, qi, ki: (bb, qi, 0)),   # residual tile
            ],
            out_specs=pl.BlockSpec((1, tq, c), lambda bb, qi, ki: (bb, qi, 0)),
            scratch_shapes=[
                pltpu.VMEM((n_heads, tq, 1), jnp.float32),          # running max
                pltpu.VMEM((n_heads, tq, 1), jnp.float32),          # running denominator
                pltpu.VMEM((n_heads, tq, dim_head), jnp.float32),   # per-head accumulator
            ],
        ),
        compiler_params=pltpu.CompilerParams(
            dimension_semantics=("parallel", "parallel", "arbitrary"),
            vmem_limit_bytes=_VMEM_LIMIT,
        ),
        cost_estimate=cost,
    )(qkv, qkv, qkv, w_out, b_out, residual)


# ---------------------------------------------------------------------------
# Module (forward pass only, use_conv=False, dropout -> identity at inference)
# ---------------------------------------------------------------------------

class MultiHeadSelfAttentionPallas:
    def __init__(self, in_channels, n_heads, dim_head, dropout=0.0,
                 dtype=jnp.float32, key=jax.random.PRNGKey(0)):
        assert in_channels == n_heads * dim_head
        assert in_channels % 32 == 0      # GroupNorm(32, in_channels)
        assert in_channels % 128 == 0     # lane-dense head blocks (see pallas_flash_mha_out_proj)
        self.in_channels = in_channels
        self.n_heads = n_heads
        self.dim_head = dim_head
        self.dropout = dropout            # TODO(synk): training-mode dropout not implemented
        self.num_groups = 32
        self.eps = 1e-6
        self.scale = 1.0 / math.sqrt(dim_head)
        self.dtype = dtype                # bf16 operands with f32 accumulation supported

        c = in_channels
        k1, k2, k3, k4, k5, k6 = jax.random.split(key, 6)
        # f32 master parameters (reference path). Linear weights are pre-transposed (in, out).
        self.w_qkv = 0.02 * jax.random.normal(k1, (c, 3 * c), jnp.float32)
        self.b_qkv = 0.02 * jax.random.normal(k2, (1, 3 * c), jnp.float32)
        self.w_out = 0.02 * jax.random.normal(k3, (c, c), jnp.float32)
        self.b_out = 0.02 * jax.random.normal(k4, (1, c), jnp.float32)
        self.gamma = 1.0 + 0.1 * jax.random.normal(k5, (1, c), jnp.float32)
        self.beta = 0.1 * jax.random.normal(k6, (1, c), jnp.float32)

        # Kernel-side parameters: softmax scale folded into the Q columns of the QKV
        # projection (so the resident Q tile is never rescaled in the KV loop),
        # weights cast to the compute dtype; small biases stay f32.
        qscale = jnp.concatenate([jnp.full((c,), self.scale, jnp.float32),
                                  jnp.ones((2 * c,), jnp.float32)])[None, :]
        self.w_qkv_k = (self.w_qkv * qscale).astype(dtype)
        self.b_qkv_k = self.b_qkv * qscale
        self.w_out_k = self.w_out.astype(dtype)

    def __call__(self, x, causal_mask=None):
        b, s, c = x.shape
        assert c == self.in_channels
        x = x.astype(self.dtype)
        # GroupNorm stats only (per-channel scale/shift); the application is fused
        # into the QKV projection so the normalized activation never hits HBM.
        gn_scale, gn_shift = pallas_group_norm_stats(
            x, self.gamma, self.beta, self.num_groups, self.eps)
        qkv = pallas_norm_qkv_linear(x, gn_scale, gn_shift,
                                     self.w_qkv_k, self.b_qkv_k)            # (B, S, 3C)
        # Flash attention with the output projection + residual fused into the epilogue.
        # Note: matching the PyTorch module, a non-None causal_mask is treated as a
        # "use lower-triangular mask" flag (the module rebuilds LowerTriangularMask()).
        out = pallas_flash_mha_out_proj(qkv, self.w_out_k, self.b_out, x,
                                        self.n_heads, self.dim_head,
                                        causal=causal_mask is not None)     # (B, S, C)
        return out


# ---------------------------------------------------------------------------
# Pure-JAX reference for the correctness check
# ---------------------------------------------------------------------------

def reference_forward(mod, x, causal=False):
    b, s, c = x.shape
    hp = lax.Precision.HIGHEST
    g, gs = mod.num_groups, c // mod.num_groups

    xf = x.astype(jnp.float32)
    xt = jnp.transpose(xf, (0, 2, 1))                  # (B, C, S)
    xg = xt.reshape(b, g, gs * s)
    mean = jnp.mean(xg, axis=-1, keepdims=True)
    var = jnp.var(xg, axis=-1, keepdims=True)
    xg = (xg - mean) * lax.rsqrt(var + mod.eps)
    xt = xg.reshape(b, c, s) * mod.gamma[0][:, None] + mod.beta[0][:, None]
    xn = jnp.transpose(xt, (0, 2, 1))                  # (B, S, C)

    qkv = jnp.einsum("bsc,cd->bsd", xn, mod.w_qkv, precision=hp) + mod.b_qkv[0]
    q, k, v = jnp.split(qkv, 3, axis=-1)

    def heads(t):
        return jnp.transpose(t.reshape(b, s, mod.n_heads, mod.dim_head), (0, 2, 1, 3))

    q, k, v = heads(q), heads(k), heads(v)
    scores = jnp.einsum("bhqd,bhkd->bhqk", q, k, precision=hp) * mod.scale
    if causal:
        tri = jnp.tril(jnp.ones((s, s), dtype=bool))
        scores = jnp.where(tri, scores, -jnp.inf)
    p = jax.nn.softmax(scores, axis=-1)
    o = jnp.einsum("bhqk,bhkd->bhqd", p, v, precision=hp)
    o = jnp.transpose(o, (0, 2, 1, 3)).reshape(b, s, c)
    return xf + jnp.einsum("bsc,cd->bsd", o, mod.w_out, precision=hp) + mod.b_out[0]


# ---------------------------------------------------------------------------

if __name__ == "__main__":
    root = jax.random.PRNGKey(0)
    k_x, k_params = jax.random.split(root)

    B, S = 2, 8
    N_HEADS, DIM_HEAD = 2, 64
    C = N_HEADS * DIM_HEAD          # in_channels = 128 (multiple of 32 for GroupNorm)

    x = jax.random.normal(k_x, (B, S, C), jnp.float32)

    # f32 operands: tight correctness check (non-causal and causal).
    mod = MultiHeadSelfAttentionPallas(C, N_HEADS, DIM_HEAD, key=k_params,
                                       dtype=jnp.float32)
    out = jax.block_until_ready(mod(x))
    ref = reference_forward(mod, x, causal=False)
    assert out.shape == (B, S, C), out.shape
    assert jnp.allclose(out, ref, atol=1e-3, rtol=1e-3), "non-causal f32 mismatch"

    out_c = jax.block_until_ready(mod(x, causal_mask=True))
    ref_c = reference_forward(mod, x, causal=True)
    assert jnp.allclose(out_c, ref_c, atol=1e-3, rtol=1e-3), "causal f32 mismatch"

    # bf16 operands / f32 accumulation: loose correctness check.
    mod_bf = MultiHeadSelfAttentionPallas(C, N_HEADS, DIM_HEAD, key=k_params,
                                          dtype=jnp.bfloat16)
    x_bf = x.astype(jnp.bfloat16)
    out_bf = jax.block_until_ready(mod_bf(x_bf))
    ref_bf = reference_forward(mod_bf, x_bf, causal=False)
    assert jnp.allclose(out_bf.astype(jnp.float32), ref_bf.astype(jnp.float32),
                        atol=5e-2, rtol=5e-2), "bf16 mismatch"

    print("KERNEL_OK")
</pallas_src>

<mosaic_0001>
module attributes {stable_mosaic.version = 11 : i64} {
  func.func @_gn_stats_kernel(%arg0: i32, %arg1: i32, %arg2: memref<1x8x128xf32, #tpu.memory_space<vmem>>, %arg3: memref<128x32xf32, #tpu.memory_space<vmem>>, %arg4: memref<1x128xf32, #tpu.memory_space<vmem>>, %arg5: memref<1x128xf32, #tpu.memory_space<vmem>>, %arg6: memref<1x1x128xf32, #tpu.memory_space<vmem>>, %arg7: memref<1x1x128xf32, #tpu.memory_space<vmem>>, %arg8: memref<1x128xf32, #tpu.memory_space<vmem>>, %arg9: memref<1x128xf32, #tpu.memory_space<vmem>>) attributes {dimension_semantics = [#tpu.dimension_semantics<parallel>, #tpu.dimension_semantics<arbitrary>], iteration_bounds = array<i64: 2, 1>, scalar_prefetch = 0 : i64, scratch_operands = 2 : i64, tpu.core_type = #tpu.core_type<tc>, window_params = [{transform_indices = @transform_0, window_bounds = array<i64: 1, 8, 128>}, {pipeline_mode = #tpu.pipeline_mode<synchronous>, transform_indices = @transform_1, window_bounds = array<i64: 128, 32>}, {pipeline_mode = #tpu.pipeline_mode<synchronous>, transform_indices = @transform_2, window_bounds = array<i64: 1, 128>}, {pipeline_mode = #tpu.pipeline_mode<synchronous>, transform_indices = @transform_3, window_bounds = array<i64: 1, 128>}, {transform_indices = @transform_4, window_bounds = array<i64: 1, 1, 128>}, {transform_indices = @transform_5, window_bounds = array<i64: 1, 1, 128>}]} {
    %c0_i32 = arith.constant 0 : i32
    %0 = arith.cmpi eq, %arg1, %c0_i32 : i32
    %1 = arith.extui %0 : i1 to i32
    %c0_i32_0 = arith.constant 0 : i32
    %2 = arith.cmpi ne, %1, %c0_i32_0 : i32
    scf.if %2 {
      %cst_14 = arith.constant 0.000000e+00 : f32
      %19 = vector.broadcast %cst_14 : f32 to vector<1x128xf32>
      %c0_15 = arith.constant 0 : index
      %c0_16 = arith.constant 0 : index
      %20 = vector.load %arg8[%c0_15, %c0_16] : memref<1x128xf32, #tpu.memory_space<vmem>>, vector<1x128xf32>
      tpu.vector_store %arg8[%c0_15, %c0_16], %19 {strides = array<i32>} : memref<1x128xf32, #tpu.memory_space<vmem>>, vector<1x128xf32>,
      %cst_17 = arith.constant 0.000000e+00 : f32
      %21 = vector.broadcast %cst_17 : f32 to vector<1x128xf32>
      %c0_18 = arith.constant 0 : index
      %c0_19 = arith.constant 0 : index
      %22 = vector.load %arg9[%c0_18, %c0_19] : memref<1x128xf32, #tpu.memory_space<vmem>>, vector<1x128xf32>
      tpu.vector_store %arg9[%c0_18, %c0_19], %21 {strides = array<i32>} : memref<1x128xf32, #tpu.memory_space<vmem>>, vector<1x128xf32>,
    } else {
    }
    %c0 = arith.constant 0 : index
    %c0_1 = arith.constant 0 : index
    %c0_2 = arith.constant 0 : index
    %3 = vector.load %arg2[%c0, %c0_1, %c0_2] : memref<1x8x128xf32, #tpu.memory_space<vmem>>, vector<1x8x128xf32>
    %4 = vector.shape_cast %3 : vector<1x8x128xf32> to vector<8x128xf32>
    %c0_3 = arith.constant 0 : index
    %c0_4 = arith.constant 0 : index
    %5 = vector.load %arg8[%c0_3, %c0_4] : memref<1x128xf32, #tpu.memory_space<vmem>>, vector<1x128xf32>
    %cst = arith.constant dense<0.000000e+00> : vector<128xf32>
    %6 = vector.multi_reduction <add>, %4, %cst [0] : vector<8x128xf32> to vector<128xf32>
    %7 = vector.shape_cast %6 : vector<128xf32> to vector<1x128xf32>
    %8 = arith.addf %5, %7 : vector<1x128xf32>
    %c0_5 = arith.constant 0 : index
    %c0_6 = arith.constant 0 : index
    %9 = vector.load %arg8[%c0_5, %c0_6] : memref<1x128xf32, #tpu.memory_space<vmem>>, vector<1x128xf32>
    tpu.vector_store %arg8[%c0_5, %c0_6], %8 {strides = array<i32>} : memref<1x128xf32, #tpu.memory_space<vmem>>, vector<1x128xf32>,
    %c0_7 = arith.constant 0 : index
    %c0_8 = arith.constant 0 : index
    %10 = vector.load %arg9[%c0_7, %c0_8] : memref<1x128xf32, #tpu.memory_space<vmem>>, vector<1x128xf32>
    %11 = arith.mulf %4, %4 : vector<8x128xf32>
    %cst_9 = arith.constant dense<0.000000e+00> : vector<128xf32>
    %12 = vector.multi_reduction <add>, %11, %cst_9 [0] : vector<8x128xf32> to vector<128xf32>
    %13 = vector.shape_cast %12 : vector<128xf32> to vector<1x128xf32>
    %14 = arith.addf %10, %13 : vector<1x128xf32>
    %c0_10 = arith.constant 0 : index
    %c0_11 = arith.constant 0 : index
    %15 = vector.load %arg9[%c0_10, %c0_11] : memref<1x128xf32, #tpu.memory_space<vmem>>, vector<1x128xf32>
    tpu.vector_store %arg9[%c0_10, %c0_11], %14 {strides = array<i32>} : memref<1x128xf32, #tpu.memory_space<vmem>>, vector<1x128xf32>,
    %c0_i32_12 = arith.constant 0 : i32
    %16 = arith.cmpi eq, %arg1, %c0_i32_12 : i32
    %17 = arith.extui %16 : i1 to i32
    %c0_i32_13 = arith.constant 0 : i32
    %18 = arith.cmpi ne, %17, %c0_i32_13 : i32
    scf.if %18 {
      %c0_14 = arith.constant 0 : index
      %c0_15 = arith.constant 0 : index
      %19 = vector.load %arg3[%c0_14, %c0_15] : memref<128x32xf32, #tpu.memory_space<vmem>>, vector<128x32xf32>
      %c0_16 = arith.constant 0 : index
      %c0_17 = arith.constant 0 : index
      %20 = vector.load %arg8[%c0_16, %c0_17] : memref<1x128xf32, #tpu.memory_space<vmem>>, vector<1x128xf32>
      %cst_18 = arith.constant dense<0.000000e+00> : vector<1x32xf32>
      %21 = tpu.matmul %20, %19, %cst_18 {dimension_numbers = #tpu.dot_dimension_numbers<[1], [0], [0], [1], [0, 0, 1, 1], [], []>} : vector<1x128xf32>, vector<128x32xf32>, vector<1x32xf32> -> vector<1x32xf32>
      %cst_19 = arith.constant 3.125000e-02 : f32
      %22 = vector.broadcast %cst_19 : f32 to vector<1x32xf32>
      %23 = arith.mulf %21, %22 : vector<1x32xf32>
      %c0_20 = arith.constant 0 : index
      %c0_21 = arith.constant 0 : index
      %24 = vector.load %arg9[%c0_20, %c0_21] : memref<1x128xf32, #tpu.memory_space<vmem>>, vector<1x128xf32>
      %cst_22 = arith.constant dense<0.000000e+00> : vector<1x32xf32>
      %25 = tpu.matmul %24, %19, %cst_22 {dimension_numbers = #tpu.dot_dimension_numbers<[1], [0], [0], [1], [0, 0, 1, 1], [], []>} : vector<1x128xf32>, vector<128x32xf32>, vector<1x32xf32> -> vector<1x32xf32>
      %cst_23 = arith.constant 3.125000e-02 : f32
      %26 = vector.broadcast %cst_23 : f32 to vector<1x32xf32>
      %27 = arith.mulf %25, %26 : vector<1x32xf32>
      %28 = arith.mulf %23, %23 : vector<1x32xf32>
      %29 = arith.subf %27, %28 : vector<1x32xf32>
      %cst_24 = arith.constant 9.99999997E-7 : f32
      %30 = vector.broadcast %cst_24 : f32 to vector<1x32xf32>
      %31 = arith.addf %29, %30 : vector<1x32xf32>
      %32 = math.rsqrt %31 : vector<1x32xf32>
      %cst_25 = arith.constant dense<0.000000e+00> : vector<1x128xf32>
      %33 = tpu.matmul %23, %19, %cst_25 {dimension_numbers = #tpu.dot_dimension_numbers<[1], [1], [0], [0], [0, 0, 1, 0], [], []>} : vector<1x32xf32>, vector<128x32xf32>, vector<1x128xf32> -> vector<1x128xf32>
      %cst_26 = arith.constant dense<0.000000e+00> : vector<1x128xf32>
      %34 = tpu.matmul %32, %19, %cst_26 {dimension_numbers = #tpu.dot_dimension_numbers<[1], [1], [0], [0], [0, 0, 1, 0], [], []>} : vector<1x32xf32>, vector<128x32xf32>, vector<1x128xf32> -> vector<1x128xf32>
      %c0_27 = arith.constant 0 : index
      %c0_28 = arith.constant 0 : index
      %35 = vector.load %arg4[%c0_27, %c0_28] : memref<1x128xf32, #tpu.memory_space<vmem>>, vector<1x128xf32>
      %36 = arith.mulf %34, %35 : vector<1x128xf32>
      %c0_29 = arith.constant 0 : index
      %c0_30 = arith.constant 0 : index
      %c0_31 = arith.constant 0 : index
      %37 = vector.load %arg6[%c0_29, %c0_30, %c0_31] : memref<1x1x128xf32, #tpu.memory_space<vmem>>, vector<1x1x128xf32>
      %38 = vector.shape_cast %37 : vector<1x1x128xf32> to vector<1x128xf32>
      %39 = vector.shape_cast %36 : vector<1x128xf32> to vector<1x1x128xf32>
      tpu.vector_store %arg6[%c0_29, %c0_30, %c0_31], %39 {strides = array<i32>} : memref<1x1x128xf32, #tpu.memory_space<vmem>>, vector<1x1x128xf32>,
      %c0_32 = arith.constant 0 : index
      %c0_33 = arith.constant 0 : index
      %40 = vector.load %arg5[%c0_32, %c0_33] : memref<1x128xf32, #tpu.memory_space<vmem>>, vector<1x128xf32>
      %41 = arith.mulf %33, %36 : vector<1x128xf32>
      %42 = arith.subf %40, %41 : vector<1x128xf32>
      %c0_34 = arith.constant 0 : index
      %c0_35 = arith.constant 0 : index
      %c0_36 = arith.constant 0 : index
      %43 = vector.load %arg7[%c0_34, %c0_35, %c0_36] : memref<1x1x128xf32, #tpu.memory_space<vmem>>, vector<1x1x128xf32>
      %44 = vector.shape_cast %43 : vector<1x1x128xf32> to vector<1x128xf32>
      %45 = vector.shape_cast %42 : vector<1x128xf32> to vector<1x1x128xf32>
      tpu.vector_store %arg7[%c0_34, %c0_35, %c0_36], %45 {strides = array<i32>} : memref<1x1x128xf32, #tpu.memory_space<vmem>>, vector<1x1x128xf32>,
    } else {
    }
    return
  }
  func.func @transform_0(%arg0: i32, %arg1: i32) -> (i32, i32, i32) {
    %c0_i32 = arith.constant 0 : i32
    %c0_i32_0 = arith.constant 0 : i32
    return %arg0, %arg1, %c0_i32 : i32, i32, i32
  }
  func.func @transform_1(%arg0: i32, %arg1: i32) -> (i32, i32) {
    %c0_i32 = arith.constant 0 : i32
    %c0_i32_0 = arith.constant 0 : i32
    %c0_i32_1 = arith.constant 0 : i32
    return %c0_i32, %c0_i32_0 : i32, i32
  }
  func.func @transform_2(%arg0: i32, %arg1: i32) -> (i32, i32) {
    %c0_i32 = arith.constant 0 : i32
    %c0_i32_0 = arith.constant 0 : i32
    %c0_i32_1 = arith.constant 0 : i32
    return %c0_i32, %c0_i32_0 : i32, i32
  }
  func.func @transform_3(%arg0: i32, %arg1: i32) -> (i32, i32) {
    %c0_i32 = arith.constant 0 : i32
    %c0_i32_0 = arith.constant 0 : i32
    %c0_i32_1 = arith.constant 0 : i32
    return %c0_i32, %c0_i32_0 : i32, i32
  }
  func.func @transform_4(%arg0: i32, %arg1: i32) -> (i32, i32, i32) {
    %c0_i32 = arith.constant 0 : i32
    %c0_i32_0 = arith.constant 0 : i32
    %c0_i32_1 = arith.constant 0 : i32
    return %arg0, %c0_i32, %c0_i32_0 : i32, i32, i32
  }
  func.func @transform_5(%arg0: i32, %arg1: i32) -> (i32, i32, i32) {
    %c0_i32 = arith.constant 0 : i32
    %c0_i32_0 = arith.constant 0 : i32
    %c0_i32_1 = arith.constant 0 : i32
    return %arg0, %c0_i32, %c0_i32_0 : i32, i32, i32
  }
}

</mosaic_0001>

<bundles_post_ra>
// kernel: tpu_custom_call.1
= control target key start
LH: loop header
LB: loop body
LE: loop exit
PB: predicated region body
PF: predicated region fallthrough
CT: control target
= control target key end

     0   :  { %11 = vsyncpa [#allocation5], 0  ;;  %s1626_s0 = inlined_call_operand.vmem [shape: f32[2,8,128], index: 0, kind: input, shape index: {}]   ;;  %s1627_s1 = inlined_call_operand.vmem [shape: f32[128,32], index: 1, kind: input, shape index: {}]   ;;  %s1628_s2 = inlined_call_operand.vmem [shape: f32[1,128], index: 2, kind: input, shape index: {}]   ;;  %s1629_s3 = inlined_call_operand.vmem [shape: f32[1,128], index: 3, kind: input, shape index: {}]   ;;  %s1630_s4 = inlined_call_operand.hbm [shape: f32[2,1,128], index: 4, kind: output, shape index: {0}]   ;;  %s1631_s5 = inlined_call_operand.hbm [shape: f32[2,1,128], index: 5, kind: output, shape index: {1}]  }
   0x1   :  { %13 = vsyncpa [#allocation5 + $0x1], 0 }
   0x2   :  { %14 = vsyncpa [#allocation7], 0 }
   0x3   :  { %16 = vsyncpa [#allocation7 + $0x1], 0  ;;  %s1229_s18 = smov 0   ;;  %s1231_s19 = smov 0  }
   0x4   :  { %s1233_s20 = smov 0   ;;  %s1235_s21 = smov 0  }
   0x5   :  { %s1237_s22 = smov 0   ;;  %s1239_s23 = smov 0  }
   0x6 LB: > { %s771_s24 = sadd.s32 4294967295, %s1193_s23   ;;  %s772_s25 = sadd.s32 4294967294, %s1193_s23   ;;  %s1193_s23 = sphi %s1239_s23, %s22_s23   ;;  %s1189_s22 = sphi %s1237_s22, %s1640_s22   ;;  %s1185_s21 = sphi %s1235_s21, %s1639_s21   ;;  %s1181_s20 = sphi %s1233_s20, %s1638_s20   ;;  %s1177_s19 = sphi %s1231_s19, %s1637_s19   ;;  %s1173_s18 = sphi %s1229_s18, %s1636_s18  }
   0x7   : > { %s34_s26 = sadd.s32 1, %s1189_s22  ;;  %s132_s27 = sadd.s32 1, %s1181_s20 }
   0x8   : > { %p36_p0 = scmp.ge.s32.totalorder %s34_s26, 2  ;;  %p142_p1 = scmp.ne.s32.totalorder %s1181_s20, %s1177_s19 }
   0x9   : > { %p143_p2 = scmp.eq.s32.totalorder %s771_s24, 1  ;;  %p148_p3 = scmp.ne.s32.totalorder %s1177_s19, %s1173_s18 }
   0xa   : > { %s1642_s26 = smov (%p36_p0, %s34_s26), 0  ;;  %p149_p5 = scmp.eq.s32.totalorder %s772_s25, 1 }
   0xb   : > { %p1269_p4 = por %p143_p2, %p142_p1  ;;  %s129_s29 = ssub.s32 %s1189_s22, %s1642_s26 }
   0xc   : > { %p775_p6 = scmp.ge.s32.totalorder %s1193_s23, 1  ;;  %p130_p7 = scmp.eq.s32.totalorder %s129_s29, 0 }
   0xd   : > { %p1276_p8 = por %p149_p5, %p148_p3  ;;  %p212_p9 = scmp.lt.s32.totalorder %s1193_s23, 3 }
   0xe   : > { %s1282_s6 = scalar_select %p130_p7, %s1181_s20, %s132_s27  }
   0xf   : > { %p213_p10 = pnand %p775_p6, %p212_p9 }
  0x10   : > { %p245_p11 = scmp.lt.s32.totalorder (!%p213_p10), %s1185_s21, 1  ;;  %s811_s17 = sshll.u32 (!%p213_p10), %s1185_s21, 4 }
  0x11   : > { %216 = sbr.rel (%p213_p10) target bundleno = 502 (0x1f6), region = 36  ;;  %s1550_s7 = scalar_lea.hbm (!%p213_p10), %s1630_s4, %s811_s17 }
  0x12   : > { %s1197_s15 = smov (!%p213_p10), [#allocation4]  }
  0x13   : > { %s1091_s16 = sshll.u32 (!%p213_p10), %s1197_s15, 4  ;;  %s1092_s16 = int_to_ptr.vmem [resolvable:$false] %s1091_s16 }
  0x14   : > { %s1093_s27 = scalar_lea.vmem (!%p213_p10), %s1092_s16, 32 }
  0x16   : > { %v1287_v0 = vld [vmem:[%s1627_s1 + $0x78] sm:$0xff]  ;;  %v1195_v1 = vmov 0.0   ;;  %v1297_v2 = vld [vmem:[%s1627_s1 + $0x70] sm:$0xff]  ;;  %s246_s11 = scalar_select %p245_p11, %s1185_s21, 1  ;;  %v1307_v3 = vld [vmem:[%s1627_s1 + $0x68] sm:$0xff]  ;;  %vm1196_vm0 = vmmov 0  }
  0x17   : > { %883 = vmatprep.subr.mxu0 %v1195_v1  ;;  %256 = vst [vmem:[#allocation2] sm:$0x1] %v1195_v1  ;;  %257 = vst [vmem:[#allocation3] sm:$0x1] %v1195_v1  ;;  %918 = vmatprep.subr.mxu1 %v1195_v1  ;;  %v1316_v4 = vld [vmem:[%s1627_s1 + $0x60] sm:$0xff]  ;;  %v1328_v6 = vld [vmem:[%s1627_s1 + $0x58] sm:$0xff] }
  0x18   : > { %884 = vmatpush3.msra.mxu0 %v1287_v0  ;;  %919 = vmatpush3.msra.mxu1 %v1287_v0  ;;  %s776_s14 = sshll.u32 %s246_s11, 3  ;;  %v1337_v9 = vld [vmem:[%s1627_s1 + $0x50] sm:$0xff]  ;;  %v1346_v12 = vld [vmem:[%s1627_s1 + $0x48] sm:$0xff]  ;;  %v1355_v15 = vld [vmem:[%s1627_s1 + $0x40] sm:$0xff]  ;;  %vm445_vm1 = vcmask 261120  }
  0x19   : > { %885 = vmatprep.subr.mxu0 %v1195_v1  ;;  %920 = vmatprep.subr.mxu1 %v1195_v1  ;;  %s251_s25 = scalar_lea.vmem %s1626_s0, %s776_s14  ;;  %v1364_v18 = vld [vmem:[%s1627_s1 + $0x38] sm:$0xff]  ;;  %v1373_v22 = vld [vmem:[%s1627_s1 + $0x30] sm:$0xff]  ;;  %v1382_v26 = vld [vmem:[%s1627_s1 + $0x28] sm:$0xff]  ;;  %s1538_s14 = sand.u32 1, %s1177_s19  }
  0x1a   : > { %886 = vmatpush3.msra.mxu0 %v1297_v2  ;;  %921 = vmatpush3.msra.mxu1 %v1297_v2  ;;  %v258_v5 = vld [vmem:[%s251_s25] sm:$0xff]  ;;  %v1400_v31 = vld [vmem:[%s1627_s1 + $0x18] sm:$0xff]  ;;  %v1409_v32 = vld [vmem:[%s1627_s1 + $0x10] sm:$0xff]  ;;  %s238_s24 = scalar_lea.vmem [#allocation4], %s1538_s14  ;;  %s1632_s10 = scalar_lea.vmem [#allocation6], %s1538_s14 }
  0x1b   : > { %887 = vmatprep.subr.mxu0 %v1195_v1  ;;  %922 = vmatprep.subr.mxu1 %v1195_v1  ;;  %v260_v7 = vrot.slane %v258_v5, 4  ;;  %v269_v8 = vmul.f32 %v258_v5, %v258_v5  ;;  %v1391_v29 = vld [vmem:[%s1627_s1 + $0x20] sm:$0xff]  ;;  %v1418_v33 = vld [vmem:[%s1627_s1 + $0x8] sm:$0xff]  ;;  %s664_s25 = sshll.u32 %s238_s24, 4  ;;  %s1560_s11 = sshll.u32 %s1632_s10, 4  ;;  %s1552_s25 = int_to_ptr.vmem [resolvable:$true] %s664_s25  ;;  %s678_s11 = int_to_ptr.vmem [resolvable:$true] %s1560_s11 }
  0x1c   : > { %888 = vmatpush3.msra.mxu0 %v1307_v3  ;;  %923 = vmatpush3.msra.mxu1 %v1307_v3  ;;  %v1427_v34 = vld [vmem:[%s1627_s1] sm:$0xff]  ;;  %s648_s12 = scalar_lea.sflag [#allocation5], %s1538_s14  ;;  %s1087_s13 = scalar_lea.vmem %s1552_s25, 16 }
  0x1d   : > { %889 = vmatprep.subr.mxu0 %v1195_v1  ;;  %924 = vmatprep.subr.mxu1 %v1195_v1  ;;  %v261_v10 = vadd.f32 %v260_v7, %v258_v5  ;;  %v270_v11 = vrot.slane %v269_v8, 4  ;;  %v640_v49 = vld [vmem:[%s1628_s2] sm:$0x1]  ;;  %p1088_p12 = scmp.ne.s32.totalorder %s1552_s25, %s1087_s13  ;;  %p1094_p1 = scmp.lt.s32.totalorder %s1552_s25, %s1092_s16 }
  0x1e   : > { %890 = vmatpush3.msra.mxu0 %v1316_v4  ;;  %925 = vmatpush3.msra.mxu1 %v1316_v4  ;;  %v259_v21 = vld [vmem:[#allocation2] sm:$0x1]  ;;  %v268_v25 = vld [vmem:[#allocation3] sm:$0x1]  ;;  %p1095_p2 = scmp.lt.s32.totalorder %s1093_s27, %s1087_s13 }
  0x1f   : > { %891 = vmatprep.subr.mxu0 %v1195_v1  ;;  %926 = vmatprep.subr.mxu1 %v1195_v1  ;;  %v262_v13 = vrot.slane %v261_v10, 2  ;;  %v271_v14 = vadd.f32 %v270_v11, %v269_v8  ;;  %v643_v52 = vld [vmem:[%s1629_s3] sm:$0x1]  ;;  %p1089_p13 = pnand %p1088_p12, %p1269_p4 }
  0x20   : > { %892 = vmatpush3.msra.mxu0 %v1328_v6  ;;  %927 = vmatpush3.msra.mxu1 %v1328_v6  ;;  %p1096_p3 = por %p1095_p2, %p1094_p1 }
  0x21   : > { %893 = vmatprep.subr.mxu0 %v1195_v1  ;;  %928 = vmatprep.subr.mxu1 %v1195_v1  ;;  %v263_v16 = vadd.f32 %v262_v13, %v261_v10  ;;  %v272_v17 = vrot.slane %v271_v14, 2  ;;  %p1090_p0 = pneg %p1089_p13 }
  0x22   : > { %894 = vmatpush3.msra.mxu0 %v1337_v9  ;;  %929 = vmatpush3.msra.mxu1 %v1337_v9 }
  0x23   : > { %895 = vmatprep.subr.mxu0 %v1195_v1  ;;  %930 = vmatprep.subr.mxu1 %v1195_v1  ;;  %v264_v19 = vrot.slane %v263_v16, 1  ;;  %v273_v20 = vadd.f32 %v272_v17, %v271_v14  ;;  %p1097_p5 = pnand %p1096_p3, %p1090_p0 }
  0x24   : > { %896 = vmatpush3.msra.mxu0 %v1346_v12  ;;  %931 = vmatpush3.msra.mxu1 %v1346_v12 }
  0x25   : > { %897 = vmatprep.subr.mxu0 %v1195_v1  ;;  %932 = vmatprep.subr.mxu1 %v1195_v1  ;;  %v265_v23 = vadd.f32 %v264_v19, %v263_v16  ;;  %v274_v24 = vrot.slane %v273_v20, 1 }
  0x26   : > { %898 = vmatpush3.msra.mxu0 %v1355_v15  ;;  %933 = vmatpush3.msra.mxu1 %v1355_v15 }
  0x27   : > { %899 = vmatprep.subr.mxu0 %v1195_v1  ;;  %934 = vmatprep.subr.mxu1 %v1195_v1  ;;  %v266_v27 = vadd.f32 %v265_v23, %v259_v21  ;;  %v275_v28 = vadd.f32 %v274_v24, %v273_v20 }
  0x28   : > { %900 = vmatpush3.msra.mxu0 %v1364_v18  ;;  %935 = vmatpush3.msra.mxu1 %v1364_v18 }
  0x29   : > { %901 = vmatprep.subr.mxu0 %v1195_v1  ;;  %936 = vmatprep.subr.mxu1 %v1195_v1  ;;  %267 = vst [vmem:[#allocation2] sm:$0x1] %v266_v27  ;;  %v276_v30 = vadd.f32 %v275_v28, %v268_v25 }
  0x2a   : > { %902 = vmatpush3.msra.mxu0 %v1373_v22  ;;  %937 = vmatpush3.msra.mxu1 %v1373_v22 }
  0x2b   : > { %903 = vmatprep.subr.mxu0 %v1195_v1  ;;  %938 = vmatprep.subr.mxu1 %v1195_v1  ;;  %277 = vst [vmem:[#allocation3] sm:$0x1] %v276_v30 }
  0x2c   : > { %904 = vmatpush3.msra.mxu0 %v1382_v26  ;;  %939 = vmatpush3.msra.mxu1 %v1382_v26 }
  0x2d   : > { %905 = vmatprep.subr.mxu0 %v1195_v1  ;;  %940 = vmatprep.subr.mxu1 %v1195_v1 }
  0x2e   : > { %906 = vmatpush3.msra.mxu0 %v1391_v29  ;;  %941 = vmatpush3.msra.mxu1 %v1391_v29 }
  0x2f   : > { %907 = vmatprep.subr.mxu0 %v1195_v1  ;;  %942 = vmatprep.subr.mxu1 %v1195_v1 }
  0x30   : > { %908 = vmatpush3.msra.mxu0 %v1400_v31  ;;  %943 = vmatpush3.msra.mxu1 %v1400_v31  ;;  %v297_v35 = vld [vmem:[#allocation2] sm:$0x1] }
  0x31   : > { %909 = vmatprep.subr.mxu0 %v1195_v1  ;;  %944 = vmatprep.subr.mxu1 %v1195_v1 }
  0x32   : > { %910 = vmatpush3.msra.mxu0 %v1409_v32  ;;  %945 = vmatpush3.msra.mxu1 %v1409_v32  ;;  %v369_v36 = vld [vmem:[#allocation3] sm:$0x1] }
  0x33   : > { %911 = vmatprep.subr.mxu0 %v1195_v1  ;;  %946 = vmatprep.subr.mxu1 %v1195_v1 }
  0x34   : > { %912 = vmatpush3.msra.mxu0 %v1418_v33  ;;  %947 = vmatpush3.msra.mxu1 %v1418_v33 }
  0x35   : > { %913 = vmatprep.subr.mxu0 %v1195_v1  ;;  %948 = vmatprep.subr.mxu1 %v1195_v1 }
  0x36   : > { %914 = vmatpush3.msra.mxu0 %v1427_v34  ;;  %915 = vmatprep.mubr.msk.f32.mxu0 %vm1196_vm0, %v1195_v1 }
  0x37   : > { %949 = vmatpush3.msra.mxu1 %v1427_v34  ;;  %950 = vmatprep.mubr.msk.f32.mxu1 %vm1196_vm0, %v1195_v1 }
  0x38   : > { %916 = vmatmul.mubr.f32.vlgmr.msra.gmra.mxu0 %v297_v35  ;;  %951 = vmatmul.mubr.f32.vlgmr.msra.gmra.mxu1 %v369_v36 }
  0x39   : > { %953 = vmatprep.subr.mxu0 %v1195_v1  ;;  %988 = vmatprep.subr.mxu1 %v1195_v1 }
  0x3a   : > { %954 = vmatpush3.xpose.msk.msra.mxu0 %vm445_vm1, %v1287_v0  ;;  %989 = vmatpush3.xpose.msk.msra.mxu1 %vm445_vm1, %v1287_v0 }
  0x3b   : > { %955 = vmatprep.subr.mxu0 %v1195_v1  ;;  %990 = vmatprep.subr.mxu1 %v1195_v1 }
  0x3c   : > { %985 = vmatprep.mubr.msk.f32.mxu0 %vm1196_vm0, %v1195_v1  ;;  %1020 = vmatprep.mubr.msk.f32.mxu1 %vm1196_vm0, %v1195_v1 }
  0x3e   : > { %956 = vmatpush3.xpose.msk.msra.mxu0 %vm445_vm1, %v1297_v2  ;;  %991 = vmatpush3.xpose.msk.msra.mxu1 %vm445_vm1, %v1297_v2 }
  0x3f   : > { %957 = vmatprep.subr.mxu0 %v1195_v1  ;;  %992 = vmatprep.subr.mxu1 %v1195_v1 }
  0x42   : > { %958 = vmatpush3.xpose.msk.msra.mxu0 %vm445_vm1, %v1307_v3  ;;  %993 = vmatpush3.xpose.msk.msra.mxu1 %vm445_vm1, %v1307_v3 }
  0x43   : > { %959 = vmatprep.subr.mxu0 %v1195_v1  ;;  %994 = vmatprep.subr.mxu1 %v1195_v1 }
  0x46   : > { %960 = vmatpush3.xpose.msk.msra.mxu0 %vm445_vm1, %v1316_v4  ;;  %995 = vmatpush3.xpose.msk.msra.mxu1 %vm445_vm1, %v1316_v4 }
  0x47   : > { %961 = vmatprep.subr.mxu0 %v1195_v1  ;;  %996 = vmatprep.subr.mxu1 %v1195_v1 }
  0x4a   : > { %962 = vmatpush3.xpose.msk.msra.mxu0 %vm445_vm1, %v1328_v6  ;;  %997 = vmatpush3.xpose.msk.msra.mxu1 %vm445_vm1, %v1328_v6 }
  0x4b   : > { %963 = vmatprep.subr.mxu0 %v1195_v1  ;;  %998 = vmatprep.subr.mxu1 %v1195_v1 }
  0x4e   : > { %964 = vmatpush3.xpose.msk.msra.mxu0 %vm445_vm1, %v1337_v9  ;;  %999 = vmatpush3.xpose.msk.msra.mxu1 %vm445_vm1, %v1337_v9 }
  0x4f   : > { %965 = vmatprep.subr.mxu0 %v1195_v1  ;;  %1000 = vmatprep.subr.mxu1 %v1195_v1 }
  0x52   : > { %966 = vmatpush3.xpose.msk.msra.mxu0 %vm445_vm1, %v1346_v12  ;;  %1001 = vmatpush3.xpose.msk.msra.mxu1 %vm445_vm1, %v1346_v12 }
  0x53   : > { %967 = vmatprep.subr.mxu0 %v1195_v1  ;;  %1002 = vmatprep.subr.mxu1 %v1195_v1 }
  0x56   : > { %968 = vmatpush3.xpose.msk.msra.mxu0 %vm445_vm1, %v1355_v15  ;;  %1003 = vmatpush3.xpose.msk.msra.mxu1 %vm445_vm1, %v1355_v15 }
  0x57   : > { %969 = vmatprep.subr.mxu0 %v1195_v1  ;;  %1004 = vmatprep.subr.mxu1 %v1195_v1 }
  0x5a   : > { %970 = vmatpush3.xpose.msk.msra.mxu0 %vm445_vm1, %v1364_v18  ;;  %1005 = vmatpush3.xpose.msk.msra.mxu1 %vm445_vm1, %v1364_v18 }
  0x5b   : > { %971 = vmatprep.subr.mxu0 %v1195_v1  ;;  %1006 = vmatprep.subr.mxu1 %v1195_v1 }
  0x5e   : > { %972 = vmatpush3.xpose.msk.msra.mxu0 %vm445_vm1, %v1373_v22  ;;  %1007 = vmatpush3.xpose.msk.msra.mxu1 %vm445_vm1, %v1373_v22 }
  0x5f   : > { %973 = vmatprep.subr.mxu0 %v1195_v1  ;;  %1008 = vmatprep.subr.mxu1 %v1195_v1 }
  0x62   : > { %974 = vmatpush3.xpose.msk.msra.mxu0 %vm445_vm1, %v1382_v26  ;;  %1009 = vmatpush3.xpose.msk.msra.mxu1 %vm445_vm1, %v1382_v26 }
  0x63   : > { %975 = vmatprep.subr.mxu0 %v1195_v1  ;;  %1010 = vmatprep.subr.mxu1 %v1195_v1 }
  0x66   : > { %976 = vmatpush3.xpose.msk.msra.mxu0 %vm445_vm1, %v1391_v29  ;;  %1011 = vmatpush3.xpose.msk.msra.mxu1 %vm445_vm1, %v1391_v29 }
  0x67   : > { %977 = vmatprep.subr.mxu0 %v1195_v1  ;;  %1012 = vmatprep.subr.mxu1 %v1195_v1 }
  0x6a   : > { %978 = vmatpush3.xpose.msk.msra.mxu0 %vm445_vm1, %v1400_v31  ;;  %1013 = vmatpush3.xpose.msk.msra.mxu1 %vm445_vm1, %v1400_v31 }
  0x6b   : > { %979 = vmatprep.subr.mxu0 %v1195_v1  ;;  %1014 = vmatprep.subr.mxu1 %v1195_v1 }
  0x6e   : > { %980 = vmatpush3.xpose.msk.msra.mxu0 %vm445_vm1, %v1409_v32  ;;  %1015 = vmatpush3.xpose.msk.msra.mxu1 %vm445_vm1, %v1409_v32 }
  0x6f   : > { %981 = vmatprep.subr.mxu0 %v1195_v1  ;;  %1016 = vmatprep.subr.mxu1 %v1195_v1 }
  0x72   : > { %982 = vmatpush3.xpose.msk.msra.mxu0 %vm445_vm1, %v1418_v33  ;;  %1017 = vmatpush3.xpose.msk.msra.mxu1 %vm445_vm1, %v1418_v33 }
  0x73   : > { %983 = vmatprep.subr.mxu0 %v1195_v1  ;;  %1018 = vmatprep.subr.mxu1 %v1195_v1 }
  0x76   : > { %984 = vmatpush3.xpose.msk.msra.mxu0 %vm445_vm1, %v1427_v34  ;;  %1019 = vmatpush3.xpose.msk.msra.mxu1 %vm445_vm1, %v1427_v34 }
  0xf8   : > { %v364_v37 = vpop.f32.mrf.mxu0  ;;  %v436_v38 = vpop.f32.mrf.mxu1 }
  0xf9   : > { %v368_v39 = vmul.f32 0.03125, %v364_v37  ;;  %v440_v40 = vmul.f32 0.03125, %v436_v38 }
  0xfa   : > { %v917_v41 = vpop.f32.mrf.mxu0  ;;  %v952_v42 = vpop.f32.mrf.mxu1 }
  0xfb   : > { %v441_v43 = vmul.f32 %v368_v39, %v368_v39  ;;  %986 = vmatmul.mubr.msk.f32.vlgmr.msra.gmra.mxu0 %vm445_vm1, %v368_v39 }
  0xfd   : > { %v442_v44 = vsub.f32 %v440_v40, %v441_v43 }
  0xff   : > { %v443_v45 = vadd.f32 1e-06, %v442_v44 }
 0x101   : > { %1085 = vrsqrt.f32 %v443_v45 }
 0x10e   : > { %v1086_v46 = vpop.eup %1085 }
 0x10f   : > { %1021 = vmatmul.mubr.msk.f32.vlgmr.msra.gmra.mxu1 %vm445_vm1, %v1086_v46 }
 0x1bb   : > { %v563_v47 = vpop.f32.mrf.mxu0 }
 0x1bd   : > { %v987_v48 = vpop.f32.mrf.mxu0 }
 0x1cf   : > { %v636_v50 = vpop.f32.mrf.mxu1 }
 0x1d0   : > { %v641_v51 = vmul.f32 %v640_v49, %v636_v50 }
 0x1d1   : > { %v1022_v53 = vpop.f32.mrf.mxu1 }
 0x1d2   : > { %642 = vst [vmem:[%s238_s24] sm:$0x1] %v641_v51  ;;  %v644_v54 = vmul.f32 %v641_v51, %v563_v47 }
 0x1d3   : > { %1100 = shalt.err (!%p1097_p5)
}
 0x1d4   : > { %s1101_s24 = scalar_lea.hbm %s1550_s7, 16  ;;  %s1105_s9 = scalar_lea.hbm %s1630_s4, 32 }
 0x1d5   : > { %p1102_p6 = scmp.ne.s32.totalorder %s1550_s7, %s1101_s24  ;;  %p1106_p10 = scmp.lt.s32.totalorder %s1550_s7, %s1630_s4 }
 0x1d6   : > { %p1107_p11 = scmp.lt.s32.totalorder %s1105_s9, %s1101_s24 }
 0x1d7   : > { %p1103_p7 = pnand %p1102_p6, %p1269_p4 }
 0x1d8   : > { %p1108_p12 = por %p1107_p11, %p1106_p10 }
 0x1d9   : > { %p1104_p9 = pneg %p1103_p7 }
 0x1db   : > { %p1109_p13 = pnand %p1108_p12, %p1104_p9 }
 0x1dd   : > { %1112 = shalt.err (!%p1109_p13)
}
 0x1de   : > { %1023 = dma.vmem_to_hbm [thread:$0]  (%p1269_p4), %s1552_s25, 16, %s1550_s7, %s648_s12   ;;  %v645_v55 = vsub.f32 %v643_v52, %v644_v54 }
 0x1df   : > { %s675_s10 = scalar_lea.hbm %s1631_s5, %s811_s17  ;;  %s1635_s27 = scalar_lea.vmem [#allocation6], %s1538_s14 }
 0x1e0   : > { %646 = vst [vmem:[%s1635_s27] sm:$0x1] %v645_v55  ;;  %s652_s24 = scalar_lea.sflag [#allocation7], %s1538_s14  ;;  %s1113_s29 = scalar_lea.vmem %s678_s11, 16 }
 0x1e1   : > { %p1114_p0 = scmp.ne.s32.totalorder %s678_s11, %s1113_s29  ;;  %s1198_s8 = smov [#allocation6]  }
 0x1e2   : > { %s1117_s9 = sshll.u32 %s1198_s8, 4  ;;  %s1118_s9 = int_to_ptr.vmem [resolvable:$false] %s1117_s9 }
 0x1e3   : > { %p1115_p1 = pnand %p1114_p0, %p1269_p4  ;;  %s1119_s15 = scalar_lea.vmem %s1118_s9, 32 }
 0x1e4   : > { %p1120_p3 = scmp.lt.s32.totalorder %s678_s11, %s1118_s9  ;;  %p1121_p5 = scmp.lt.s32.totalorder %s1119_s15, %s1113_s29 }
 0x1e5   : > { %p1116_p2 = pneg %p1115_p1 }
 0x1e6   : > { %p1122_p6 = por %p1121_p5, %p1120_p3 }
 0x1e8   : > { %p1123_p7 = pnand %p1122_p6, %p1116_p2 }
 0x1ea   : > { %1126 = shalt.err (!%p1123_p7)
}
 0x1eb   : > { %s1127_s21 = scalar_lea.hbm %s675_s10, 16  ;;  %s1131_s25 = scalar_lea.hbm %s1631_s5, 32 }
 0x1ec   : > { %p1128_p9 = scmp.ne.s32.totalorder %s675_s10, %s1127_s21  ;;  %p1132_p12 = scmp.lt.s32.totalorder %s675_s10, %s1631_s5 }
 0x1ed   : > { %p1133_p13 = scmp.lt.s32.totalorder %s1131_s25, %s1127_s21 }
 0x1ee   : > { %p1129_p10 = pnand %p1128_p9, %p1269_p4 }
 0x1ef   : > { %p1134_p0 = por %p1133_p13, %p1132_p12 }
 0x1f0   : > { %p1130_p11 = pneg %p1129_p10 }
 0x1f2   : > { %p1135_p1 = pnand %p1134_p0, %p1130_p11 }
 0x1f4   : > { %1138 = shalt.err (!%p1135_p1)
}
 0x1f5   : > { %1024 = dma.vmem_to_hbm [thread:$0]  (%p1269_p4), %s678_s11, 16, %s675_s10, %s652_s24  }
 0x1f6 PF: > { %p1034_p2 = scmp.ge.s32.totalorder %s1193_s23, 2  ;;  %s689_s13 = sand.u32 1, %s1173_s18  }
 0x1f7   : > { %s690_s16 = scalar_lea.sflag [#allocation5], %s689_s13 }
 0x1f8   : > { %p1028_p3 = pnand %p1034_p2, %p1276_p8 }
 0x1fa   : > { %p1029_p5 = pneg %p1028_p3 }
 0x1fc   : > { %1164 = dma.done.wait (%p1029_p5), %s690_s16, 16  }
 0x1fd   : > { %1166 = vsyncadd (%p1029_p5), %s690_s16, 4294967280  ;;  %s698_s27 = scalar_lea.sflag [#allocation7], %s689_s13 }
 0x1fe   : > { %1168 = dma.done.wait (%p1029_p5), %s698_s27, 16  }
 0x1ff   : > { %1170 = vsyncadd (%p1029_p5), %s698_s27, 4294967280  ;;  %s22_s23 = sadd.s32 1, %s1193_s23   ;;  %s1636_s18 = smov %s1177_s19 }
 0x200   : > { %p19_p6 = scmp.ge.s32.totalorder %s22_s23, 4   ;;  %s1637_s19 = smov %s1181_s20 }
 0x201   : > { %s1638_s20 = smov %s1282_s6  ;;  %s1639_s21 = smov %s1189_s22 }
 0x202   : > { %s1640_s22 = smov %s1642_s26  ;;  %21 = sbr.rel (!%p19_p6) target bundleno = 6 (0x6), region = 96 }
 0x207   :  { %702 = vsyncpa [#allocation5], 1 }
 0x208   :  { %704 = vsyncpa [#allocation5 + $0x1], 1 }
 0x209   :  { %705 = vsyncpa [#allocation7], 1 }
 0x20a   :  { %707 = vsyncpa [#allocation7 + $0x1], 1 }

</bundles_post_ra>
